<compile_context>
chip_gen: v7x
topology: tpu7x:2x2x1
jax: 0.10.0
libtpu: 0.0.40
codegen_flags: <defaults>
</compile_context>

<pallas_src>
import functools

import jax
import jax.numpy as jnp
from jax.experimental import pallas as pl
from jax.experimental.pallas import tpu as pltpu

LANE = 128
SUBLANE = 8


def _round_up(n, m):
    return (n + m - 1) // m * m


def _mlp_kernel(num_layers, x_ref, *rest):
    """rest = (w0, b0, w1, b1, ..., w_{L-1}, b_{L-1}, out_ref).

    x_ref:   VMEM (tm, in_pad_0)  bf16  — one batch tile of the (padded) input.
    w_i:     VMEM (in_pad_i, out_pad_i) bf16 — zero-padded weight, slope 20*a_i folded in.
    b_i:     VMEM (1, out_pad_i)  f32   — zero-padded bias row, slope folded in.
    out_ref: VMEM (tm, out_pad)   f32.
    """
    out_ref = rest[-1]
    wbs = rest[:-1]

    cdt = x_ref.dtype                     # bf16 compute dtype for MXU operands
    h = x_ref[...]
    for i in range(num_layers):
        w = wbs[2 * i][...]
        b = wbs[2 * i + 1][...]
        # bf16 x bf16 matmul with f32 accumulation on the MXU.
        z = jnp.dot(h, w, preferred_element_type=jnp.float32) + b
        if i < num_layers - 1:
            # Slope 20*a_i is already folded into w/b; tanh runs in f32 on the EUP.
            # Carry the activation in bf16 between layers (vreg pressure at large tm).
            h = jnp.tanh(z).astype(cdt)
        else:
            out_ref[...] = z.astype(out_ref.dtype)


def init_xpinn_params(key, layers):
    """Parameter init matching the PyTorch module: xavier_normal_ weights, zero biases,
    activation slope parameters = 0.05."""
    weights, biases = [], []
    for i in range(len(layers) - 1):
        fan_in, fan_out = layers[i], layers[i + 1]
        key, sub = jax.random.split(key)
        std = (2.0 / (fan_in + fan_out)) ** 0.5
        # PyTorch Linear weight is (out, in); we store transposed (in, out) for x @ W.
        w = std * jax.random.normal(sub, (fan_in, fan_out), dtype=jnp.float32)
        b = jnp.zeros((fan_out,), dtype=jnp.float32)
        weights.append(w)
        biases.append(b)
    acts = jnp.full((len(layers) - 2,), 0.05, dtype=jnp.float32)
    return weights, biases, acts


def prepare_params(weights, biases, acts, *, compute_dtype=jnp.bfloat16):
    """Fold the 20*a_i slopes into the hidden-layer weights/biases, zero-pad each layer to
    its own 128-aligned shape and cast weights to the MXU compute dtype.

    Call this once per optimizer step (when params change), NOT once per forward call —
    it is the per-call HBM re-staging that the kernel is designed to avoid.
    Returns a flat list [w0_p, b0_p, w1_p, b1_p, ...]."""
    num_layers = len(weights)
    padded = []
    for i, (w, b) in enumerate(zip(weights, biases)):
        fi, fo = w.shape
        if i < num_layers - 1:
            scale = 20.0 * acts[i]
            w = w * scale
            b = b * scale
        fi_p = _round_up(fi, LANE)
        fo_p = _round_up(fo, LANE)
        w_p = (
            jnp.zeros((fi_p, fo_p), compute_dtype)
            .at[:fi, :fo]
            .set(w.astype(compute_dtype))
        )
        b_p = jnp.zeros((1, fo_p), jnp.float32).at[0, :fo].set(b)
        padded += [w_p, b_p]
    return padded


def prepare_inputs(x, *, tm, compute_dtype=jnp.bfloat16):
    """Pad the batch to a multiple of tm and the feature dim to 128 lanes, cast to the MXU
    compute dtype. For PINNs the collocation points are fixed, so do this once per dataset."""
    n, in_dim = x.shape
    in_pad = _round_up(in_dim, LANE)
    n_pad = _round_up(max(n, tm), tm)
    x_p = jnp.zeros((n_pad, in_pad), compute_dtype)
    return x_p.at[:n, :in_dim].set(x.astype(compute_dtype))


def xpinn_forward(
    x_padded,
    padded_params,
    *,
    num_layers,
    out_dim,
    n_rows,
    tm=256,
    vmem_limit_bytes=None,
):
    """Whole MLP in one Pallas kernel, tiled over the batch.

    x_padded:      (n_pad, in_pad) bf16, from prepare_inputs (n_pad % tm == 0).
    padded_params: flat list from prepare_params.
    Returns the (n_rows, out_dim) f32 output."""
    n_pad, in_pad = x_padded.shape
    assert n_pad % tm == 0, (n_pad, tm)
    grid = (n_pad // tm,)

    in_specs = [pl.BlockSpec((tm, in_pad), lambda i: (i, 0))]
    for li in range(num_layers):
        w_shape = padded_params[2 * li].shape
        b_shape = padded_params[2 * li + 1].shape
        # Grid-invariant blocks: DMA'd once, reused across all batch tiles.
        # NOTE: for much wider/deeper nets on v7x (64 MiB VMEM), consider
        # pipeline_mode=pl.Buffered(1) on these specs and an explicit vmem_limit_bytes.
        in_specs.append(pl.BlockSpec(w_shape, lambda i: (0, 0)))
        in_specs.append(pl.BlockSpec(b_shape, lambda i: (0, 0)))

    out_pad = padded_params[-1].shape[-1]
    out_spec = pl.BlockSpec((tm, out_pad), lambda i: (i, 0))

    kernel = functools.partial(_mlp_kernel, num_layers)

    y_pad = pl.pallas_call(
        kernel,
        out_shape=jax.ShapeDtypeStruct((n_pad, out_pad), jnp.float32),
        grid_spec=pl.GridSpec(grid=grid, in_specs=in_specs, out_specs=out_spec),
        compiler_params=pltpu.CompilerParams(
            dimension_semantics=("parallel",),
            vmem_limit_bytes=vmem_limit_bytes,
        ),
    )(x_padded, *padded_params)

    return y_pad[:n_rows, :out_dim]


# ----------------------------- references --------------------------------- #

def xpinn_reference(x, weights, biases, acts):
    """Pure-f32 reference identical to the PyTorch module."""
    h = x.astype(jnp.float32)
    for i, (w, b) in enumerate(zip(weights, biases)):
        h = h @ w + b
        if i < len(weights) - 1:
            h = jnp.tanh(20.0 * acts[i] * h)
    return h


def xpinn_reference_quantized(x, weights, biases, acts, compute_dtype=jnp.bfloat16):
    """Mirrors the kernel's bf16 rounding / slope folding (tight correctness check)."""
    h = x.astype(compute_dtype).astype(jnp.float32)
    num_layers = len(weights)
    for i, (w, b) in enumerate(zip(weights, biases)):
        if i < num_layers - 1:
            s = 20.0 * acts[i]
            wq = (w * s).astype(compute_dtype).astype(jnp.float32)
            bq = b * s
            h = jnp.tanh(h @ wq + bq).astype(compute_dtype).astype(jnp.float32)
        else:
            wq = w.astype(compute_dtype).astype(jnp.float32)
            h = h @ wq + b
    return h


if __name__ == "__main__":
    # Small XPINN sub-network config; batch is a modest set of collocation points so the
    # batch grid has several steps (exercises tiling, ragged padding and megacore sharding).
    layers = [2, 32, 32, 32, 1]
    batch = 2000
    tm = 256  # sweep 128 / 256 / 512 on real workloads

    key = jax.random.PRNGKey(0)
    key, xkey = jax.random.split(key)
    x = jax.random.normal(xkey, (batch, layers[0]), dtype=jnp.float32)

    weights, biases, acts = init_xpinn_params(key, layers)

    # Hoisted preparation: once per optimizer step (params) / once per dataset (inputs).
    padded_params = prepare_params(weights, biases, acts)
    x_padded = prepare_inputs(x, tm=tm)

    fwd = jax.jit(
        functools.partial(
            xpinn_forward,
            num_layers=len(weights),
            out_dim=layers[-1],
            n_rows=batch,
            tm=tm,
        )
    )
    y = jax.block_until_ready(fwd(x_padded, padded_params))
    assert y.shape == (batch, layers[-1]), y.shape

    # Tight check against a reference that mirrors the kernel's bf16 quantization.
    y_q = xpinn_reference_quantized(x, weights, biases, acts)
    err_q = jnp.max(jnp.abs(y - y_q))
    assert jnp.allclose(y, y_q, atol=1e-2, rtol=1e-2), f"quantized-ref max abs diff {err_q}"

    # Loose check against the exact f32 semantics of the original PyTorch module.
    y_ref = xpinn_reference(x, weights, biases, acts)
    err_f32 = jnp.max(jnp.abs(y - y_ref))
    assert jnp.allclose(y, y_ref, atol=5e-2, rtol=5e-2), f"f32-ref max abs diff {err_f32}"

    print("KERNEL_OK")
</pallas_src>

<mosaic_0001>
module attributes {stable_mosaic.version = 11 : i64} {
  func.func @_mlp_kernel(%arg0: i32, %arg1: memref<256x128xbf16, #tpu.memory_space<vmem>>, %arg2: memref<128x128xbf16, #tpu.memory_space<vmem>>, %arg3: memref<1x128xf32, #tpu.memory_space<vmem>>, %arg4: memref<128x128xbf16, #tpu.memory_space<vmem>>, %arg5: memref<1x128xf32, #tpu.memory_space<vmem>>, %arg6: memref<128x128xbf16, #tpu.memory_space<vmem>>, %arg7: memref<1x128xf32, #tpu.memory_space<vmem>>, %arg8: memref<128x128xbf16, #tpu.memory_space<vmem>>, %arg9: memref<1x128xf32, #tpu.memory_space<vmem>>, %arg10: memref<256x128xf32, #tpu.memory_space<vmem>>) attributes {dimension_semantics = [#tpu.dimension_semantics<parallel>], iteration_bounds = array<i64: 8>, scalar_prefetch = 0 : i64, scratch_operands = 0 : i64, tpu.core_type = #tpu.core_type<tc>, window_params = [{transform_indices = @transform_0, window_bounds = array<i64: 256, 128>}, {pipeline_mode = #tpu.pipeline_mode<synchronous>, transform_indices = @transform_1, window_bounds = array<i64: 128, 128>}, {pipeline_mode = #tpu.pipeline_mode<synchronous>, transform_indices = @transform_2, window_bounds = array<i64: 1, 128>}, {pipeline_mode = #tpu.pipeline_mode<synchronous>, transform_indices = @transform_3, window_bounds = array<i64: 128, 128>}, {pipeline_mode = #tpu.pipeline_mode<synchronous>, transform_indices = @transform_4, window_bounds = array<i64: 1, 128>}, {pipeline_mode = #tpu.pipeline_mode<synchronous>, transform_indices = @transform_5, window_bounds = array<i64: 128, 128>}, {pipeline_mode = #tpu.pipeline_mode<synchronous>, transform_indices = @transform_6, window_bounds = array<i64: 1, 128>}, {pipeline_mode = #tpu.pipeline_mode<synchronous>, transform_indices = @transform_7, window_bounds = array<i64: 128, 128>}, {pipeline_mode = #tpu.pipeline_mode<synchronous>, transform_indices = @transform_8, window_bounds = array<i64: 1, 128>}, {transform_indices = @transform_9, window_bounds = array<i64: 256, 128>}]} {
    %c0 = arith.constant 0 : index
    %c0_0 = arith.constant 0 : index
    %0 = vector.load %arg1[%c0, %c0_0] : memref<256x128xbf16, #tpu.memory_space<vmem>>, vector<256x128xbf16>
    %c0_1 = arith.constant 0 : index
    %c0_2 = arith.constant 0 : index
    %1 = vector.load %arg2[%c0_1, %c0_2] : memref<128x128xbf16, #tpu.memory_space<vmem>>, vector<128x128xbf16>
    %c0_3 = arith.constant 0 : index
    %c0_4 = arith.constant 0 : index
    %2 = vector.load %arg3[%c0_3, %c0_4] : memref<1x128xf32, #tpu.memory_space<vmem>>, vector<1x128xf32>
    %cst = arith.constant dense<0.000000e+00> : vector<256x128xf32>
    %3 = tpu.matmul %0, %1, %cst {dimension_numbers = #tpu.dot_dimension_numbers<[1], [0], [0], [1], [0, 0, 1, 1], [], []>} : vector<256x128xbf16>, vector<128x128xbf16>, vector<256x128xf32> -> vector<256x128xf32>
    %4 = vector.broadcast %2 : vector<1x128xf32> to vector<256x128xf32>
    %5 = arith.addf %3, %4 : vector<256x128xf32>
    %6 = math.tanh %5 : vector<256x128xf32>
    %7 = arith.truncf %6 : vector<256x128xf32> to vector<256x128xbf16>
    %c0_5 = arith.constant 0 : index
    %c0_6 = arith.constant 0 : index
    %8 = vector.load %arg4[%c0_5, %c0_6] : memref<128x128xbf16, #tpu.memory_space<vmem>>, vector<128x128xbf16>
    %c0_7 = arith.constant 0 : index
    %c0_8 = arith.constant 0 : index
    %9 = vector.load %arg5[%c0_7, %c0_8] : memref<1x128xf32, #tpu.memory_space<vmem>>, vector<1x128xf32>
    %cst_9 = arith.constant dense<0.000000e+00> : vector<256x128xf32>
    %10 = tpu.matmul %7, %8, %cst_9 {dimension_numbers = #tpu.dot_dimension_numbers<[1], [0], [0], [1], [0, 0, 1, 1], [], []>} : vector<256x128xbf16>, vector<128x128xbf16>, vector<256x128xf32> -> vector<256x128xf32>
    %11 = vector.broadcast %9 : vector<1x128xf32> to vector<256x128xf32>
    %12 = arith.addf %10, %11 : vector<256x128xf32>
    %13 = math.tanh %12 : vector<256x128xf32>
    %14 = arith.truncf %13 : vector<256x128xf32> to vector<256x128xbf16>
    %c0_10 = arith.constant 0 : index
    %c0_11 = arith.constant 0 : index
    %15 = vector.load %arg6[%c0_10, %c0_11] : memref<128x128xbf16, #tpu.memory_space<vmem>>, vector<128x128xbf16>
    %c0_12 = arith.constant 0 : index
    %c0_13 = arith.constant 0 : index
    %16 = vector.load %arg7[%c0_12, %c0_13] : memref<1x128xf32, #tpu.memory_space<vmem>>, vector<1x128xf32>
    %cst_14 = arith.constant dense<0.000000e+00> : vector<256x128xf32>
    %17 = tpu.matmul %14, %15, %cst_14 {dimension_numbers = #tpu.dot_dimension_numbers<[1], [0], [0], [1], [0, 0, 1, 1], [], []>} : vector<256x128xbf16>, vector<128x128xbf16>, vector<256x128xf32> -> vector<256x128xf32>
    %18 = vector.broadcast %16 : vector<1x128xf32> to vector<256x128xf32>
    %19 = arith.addf %17, %18 : vector<256x128xf32>
    %20 = math.tanh %19 : vector<256x128xf32>
    %21 = arith.truncf %20 : vector<256x128xf32> to vector<256x128xbf16>
    %c0_15 = arith.constant 0 : index
    %c0_16 = arith.constant 0 : index
    %22 = vector.load %arg8[%c0_15, %c0_16] : memref<128x128xbf16, #tpu.memory_space<vmem>>, vector<128x128xbf16>
    %c0_17 = arith.constant 0 : index
    %c0_18 = arith.constant 0 : index
    %23 = vector.load %arg9[%c0_17, %c0_18] : memref<1x128xf32, #tpu.memory_space<vmem>>, vector<1x128xf32>
    %cst_19 = arith.constant dense<0.000000e+00> : vector<256x128xf32>
    %24 = tpu.matmul %21, %22, %cst_19 {dimension_numbers = #tpu.dot_dimension_numbers<[1], [0], [0], [1], [0, 0, 1, 1], [], []>} : vector<256x128xbf16>, vector<128x128xbf16>, vector<256x128xf32> -> vector<256x128xf32>
    %25 = vector.broadcast %23 : vector<1x128xf32> to vector<256x128xf32>
    %26 = arith.addf %24, %25 : vector<256x128xf32>
    %c0_20 = arith.constant 0 : index
    %c0_21 = arith.constant 0 : index
    %27 = vector.load %arg10[%c0_20, %c0_21] : memref<256x128xf32, #tpu.memory_space<vmem>>, vector<256x128xf32>
    tpu.vector_store %arg10[%c0_20, %c0_21], %26 {strides = array<i32>} : memref<256x128xf32, #tpu.memory_space<vmem>>, vector<256x128xf32>,
    return
  }
  func.func @transform_0(%arg0: i32) -> (i32, i32) {
    %c0_i32 = arith.constant 0 : i32
    %c0_i32_0 = arith.constant 0 : i32
    return %arg0, %c0_i32 : i32, i32
  }
  func.func @transform_1(%arg0: i32) -> (i32, i32) {
    %c0_i32 = arith.constant 0 : i32
    %c0_i32_0 = arith.constant 0 : i32
    %c0_i32_1 = arith.constant 0 : i32
    return %c0_i32, %c0_i32_0 : i32, i32
  }
  func.func @transform_2(%arg0: i32) -> (i32, i32) {
    %c0_i32 = arith.constant 0 : i32
    %c0_i32_0 = arith.constant 0 : i32
    %c0_i32_1 = arith.constant 0 : i32
    return %c0_i32, %c0_i32_0 : i32, i32
  }
  func.func @transform_3(%arg0: i32) -> (i32, i32) {
    %c0_i32 = arith.constant 0 : i32
    %c0_i32_0 = arith.constant 0 : i32
    %c0_i32_1 = arith.constant 0 : i32
    return %c0_i32, %c0_i32_0 : i32, i32
  }
  func.func @transform_4(%arg0: i32) -> (i32, i32) {
    %c0_i32 = arith.constant 0 : i32
    %c0_i32_0 = arith.constant 0 : i32
    %c0_i32_1 = arith.constant 0 : i32
    return %c0_i32, %c0_i32_0 : i32, i32
  }
  func.func @transform_5(%arg0: i32) -> (i32, i32) {
    %c0_i32 = arith.constant 0 : i32
    %c0_i32_0 = arith.constant 0 : i32
    %c0_i32_1 = arith.constant 0 : i32
    return %c0_i32, %c0_i32_0 : i32, i32
  }
  func.func @transform_6(%arg0: i32) -> (i32, i32) {
    %c0_i32 = arith.constant 0 : i32
    %c0_i32_0 = arith.constant 0 : i32
    %c0_i32_1 = arith.constant 0 : i32
    return %c0_i32, %c0_i32_0 : i32, i32
  }
  func.func @transform_7(%arg0: i32) -> (i32, i32) {
    %c0_i32 = arith.constant 0 : i32
    %c0_i32_0 = arith.constant 0 : i32
    %c0_i32_1 = arith.constant 0 : i32
    return %c0_i32, %c0_i32_0 : i32, i32
  }
  func.func @transform_8(%arg0: i32) -> (i32, i32) {
    %c0_i32 = arith.constant 0 : i32
    %c0_i32_0 = arith.constant 0 : i32
    %c0_i32_1 = arith.constant 0 : i32
    return %c0_i32, %c0_i32_0 : i32, i32
  }
  func.func @transform_9(%arg0: i32) -> (i32, i32) {
    %c0_i32 = arith.constant 0 : i32
    %c0_i32_0 = arith.constant 0 : i32
    return %arg0, %c0_i32 : i32, i32
  }
}

</mosaic_0001>

<bundles_post_ra>
// kernel: xpinn_forward.1
= control target key start
LH: loop header
LB: loop body
LE: loop exit
PB: predicated region body
PF: predicated region fallthrough
CT: control target
= control target key end

     0   :  { %s3121_s0 = inlined_call_operand.hbm [shape: bf16[2048,128], index: 0, kind: input, shape index: {}]   ;;  %s3122_s1 = inlined_call_operand.hbm [shape: bf16[128,128], index: 1, kind: input, shape index: {}]   ;;  %s3123_s2 = inlined_call_operand.vmem [shape: f32[1,128], index: 2, kind: input, shape index: {}]   ;;  %s3124_s3 = inlined_call_operand.hbm [shape: bf16[128,128], index: 3, kind: input, shape index: {}]   ;;  %s3125_s4 = inlined_call_operand.vmem [shape: f32[1,128], index: 4, kind: input, shape index: {}]   ;;  %s3126_s5 = inlined_call_operand.hbm [shape: bf16[128,128], index: 5, kind: input, shape index: {}]   ;;  %s3127_s6 = inlined_call_operand.vmem [shape: f32[1,128], index: 6, kind: input, shape index: {}]   ;;  %s3128_s7 = inlined_call_operand.hbm [shape: bf16[128,128], index: 7, kind: input, shape index: {}]   ;;  %s3129_s8 = inlined_call_operand.vmem [shape: f32[1,128], index: 8, kind: input, shape index: {}]   ;;  %s3130_s9 = inlined_call_operand.vmem [shape: f32[2048,128], index: 9, kind: output, shape index: {}]  }
   0x1   :  { %3136 = sst [smem:[#allocation13_spill]] %s3130_s9 }
   0x2   :  { %14 = vsyncpa [#allocation3], 0 }
   0x3   :  { %16 = vsyncpa [#allocation3 + $0x1], 0 }
   0x4   :  { %17 = vsyncpa [#allocation5], 0 }
   0x5   :  { %18 = vsyncpa [#allocation8], 0  ;;  %s2678_s30 = smov 0   ;;  %s2680_s10 = smov 0  }
   0x6   :  { %s2682_s11 = smov 0   ;;  %s2684_s12 = smov 0  }
   0x7 LB: > { %s3133_s13 = sadd.s32 4294967295, %s2619_s12   ;;  %p44_p0 = scmp.ne.s32.totalorder %s2611_s10, %s2607_s30  ;;  %s2619_s12 = sphi %s2684_s12, %s3151_s12   ;;  %s2615_s11 = sphi %s2682_s11, %s3150_s11   ;;  %s2611_s10 = sphi %s2680_s10, %s3149_s10   ;;  %s2607_s30 = sphi %s2678_s30, %s3148_s30  }
   0x8   : > { %p2700_p1 = scmp.eq.s32.totalorder %s3133_s13, 0  ;;  %p1753_p2 = scmp.ge.s32.totalorder %s2619_s12, 1 }
   0x9   : > { %p249_p3 = scmp.lt.s32.totalorder %s2619_s12, 9  ;;  %s2621_s17 = smov [#allocation4]  }
   0xa   : > { %s3137_s14 = scalar_select %p2700_p1, 1, 0 }
   0xb   : > { %p2708_p4 = por %p2700_p1, %p44_p0  ;;  %p2712_p5 = pnand %p1753_p2, %p249_p3 }
   0xc   : > { %s261_s18 = sshll.u32 %s2621_s17, 4  ;;  %s2622_s20 = smov [#allocation7]   ;;  %s2716_s18 = int_to_ptr.vmem [resolvable:$true] %s261_s18 }
   0xd   : > { %s3138_s15 = scalar_select %p2708_p4, 1, 0 }
   0xe   : > { %s3139_s16 = scalar_select %p2712_p5, 1, 0 }
   0xf   : > { %p2131_p6 = pneg %p2712_p5  ;;  %s293_s21 = sshll.u32 %s2622_s20, 4  ;;  %s2726_s21 = int_to_ptr.vmem [resolvable:$true] %s293_s21 }
  0x10   : > { %s2623_s22 = smov [#allocation6]   ;;  %s2435_s26 = scalar_lea.hbm %s3122_s1, 1024 }
  0x11   : > { %p2722_p7 = pnand %p2131_p6, %p2700_p1  ;;  %s2728_s23 = sshll.u32 %s2623_s22, 4  ;;  %s278_s23 = int_to_ptr.vmem [resolvable:$true] %s2728_s23 }
  0x12   : > { %p2436_p8 = scmp.ne.s32.totalorder %s3122_s1, %s2435_s26  ;;  %p2442_p12 = scmp.lt.u32.totalorder %s2435_s26, %s3122_s1 }
  0x13   : > { %p2738_p9 = pneg %p2722_p7 }
  0x15   : > { %p2438_p10 = pnand %p2738_p9, %p2436_p8 }
  0x17   : > { %p2439_p11 = pneg %p2438_p10 }
  0x19   : > { %p2444_p13 = pnand %p2442_p12, %p2439_p11 }
  0x1b   : > { %2447 = shalt.err (!%p2444_p13)
}
  0x1c   : > { %s2448_s20 = scalar_lea.vmem %s2716_s18, 1024  ;;  %p2456_p6 = scmp.lt.s32.totalorder %s2716_s18, %s2716_s18 }
  0x1d   : > { %p2449_p0 = scmp.ne.s32.totalorder %s2716_s18, %s2448_s20  ;;  %p2457_p1 = scmp.lt.s32.totalorder %s2448_s20, %s2448_s20 }
  0x1f   : > { %p2451_p2 = pnand %p2449_p0, %p2738_p9  ;;  %p2458_p8 = por %p2457_p1, %p2456_p6 }
  0x21   : > { %p2452_p3 = pneg %p2451_p2 }
  0x23   : > { %p2459_p10 = pnand %p2458_p8, %p2452_p3 }
  0x25   : > { %2462 = shalt.err (!%p2459_p10)
}
  0x26   : > { %s2624_s22 = smov 64   ;;  %s2625_s24 = smov 4  }
  0x27   : > { %2134 = dma.hbm_to_vmem [thread:$0]  (!%p2722_p7), %s3122_s1, 1024, %s2716_s18, [#allocation5], %s2624_s22, %s2624_s22, %s2625_s24  }
  0x28   : > { %s2463_s30 = scalar_lea.hbm %s3126_s5, 1024 }
  0x29   : > { %p2464_p1 = scmp.ne.s32.totalorder %s3126_s5, %s2463_s30  ;;  %p2470_p13 = scmp.lt.u32.totalorder %s2463_s30, %s3126_s5 }
  0x2b   : > { %p2466_p11 = pnand %p2464_p1, %p2738_p9 }
  0x2d   : > { %p2467_p12 = pneg %p2466_p11 }
  0x2f   : > { %p2472_p0 = pnand %p2470_p13, %p2467_p12 }
  0x31   : > { %2475 = shalt.err (!%p2472_p0)
}
  0x32   : > { %s2476_s18 = scalar_lea.vmem %s2726_s21, 1024  ;;  %p2484_p8 = scmp.lt.s32.totalorder %s2726_s21, %s2726_s21 }
  0x33   : > { %p2477_p2 = scmp.ne.s32.totalorder %s2726_s21, %s2476_s18  ;;  %p2485_p10 = scmp.lt.s32.totalorder %s2476_s18, %s2476_s18 }
  0x35   : > { %p2479_p3 = pnand %p2477_p2, %p2738_p9  ;;  %p2486_p1 = por %p2485_p10, %p2484_p8 }
  0x37   : > { %p2480_p6 = pneg %p2479_p3 }
  0x39   : > { %p2487_p11 = pnand %p2486_p1, %p2480_p6 }
  0x3b   : > { %2490 = shalt.err (!%p2487_p11)
}
  0x3c   : > { %2140 = dma.hbm_to_vmem [thread:$0]  (!%p2722_p7), %s3126_s5, 1024, %s2726_s21, [#allocation8], %s2624_s22, %s2624_s22, %s2625_s24  }
  0x3d   : > { %s2491_s27 = scalar_lea.hbm %s3124_s3, 1024 }
  0x3e   : > { %p2492_p12 = scmp.ne.s32.totalorder %s3124_s3, %s2491_s27  ;;  %p2498_p2 = scmp.lt.u32.totalorder %s2491_s27, %s3124_s3 }
  0x40   : > { %p2494_p13 = pnand %p2492_p12, %p2738_p9 }
  0x42   : > { %p2495_p0 = pneg %p2494_p13 }
  0x44   : > { %p2500_p3 = pnand %p2498_p2, %p2495_p0 }
  0x46   : > { %2503 = shalt.err (!%p2500_p3)
}
  0x47   : > { %s2504_s18 = scalar_lea.vmem %s278_s23, 1024  ;;  %p2512_p1 = scmp.lt.s32.totalorder %s278_s23, %s278_s23 }
  0x48   : > { %p2505_p6 = scmp.ne.s32.totalorder %s278_s23, %s2504_s18  ;;  %p2513_p11 = scmp.lt.s32.totalorder %s2504_s18, %s2504_s18 }
  0x4a   : > { %p2507_p8 = pnand %p2505_p6, %p2738_p9  ;;  %p2514_p4 = por %p2513_p11, %p2512_p1 }
  0x4c   : > { %p2508_p10 = pneg %p2507_p8 }
  0x4e   : > { %p2515_p5 = pnand %p2514_p4, %p2508_p10 }
  0x50   : > { %2518 = shalt.err (!%p2515_p5)
}
  0x51   : > { %2137 = dma.hbm_to_vmem [thread:$0]  (!%p2722_p7), %s3124_s3, 1024, %s278_s23, [#allocation5], %s2624_s22, %s2624_s22, %s2625_s24  }
  0x52   : > { %s2626_s13 = smov [#allocation9]   ;;  %s2519_s28 = scalar_lea.hbm %s3128_s7, 1024 }
  0x53   : > { %s309_s25 = sshll.u32 %s2626_s13, 4  ;;  %p2520_p4 = scmp.ne.s32.totalorder %s3128_s7, %s2519_s28  ;;  %s310_s25 = int_to_ptr.vmem [resolvable:$true] %s309_s25 }
  0x54   : > { %p2526_p13 = scmp.lt.u32.totalorder %s2519_s28, %s3128_s7 }
  0x55   : > { %p2522_p5 = pnand %p2520_p4, %p2738_p9 }
  0x57   : > { %p2523_p12 = pneg %p2522_p5 }
  0x59   : > { %p2528_p0 = pnand %p2526_p13, %p2523_p12 }
  0x5b   : > { %2531 = shalt.err (!%p2528_p0)
}
  0x5c   : > { %s2532_s23 = scalar_lea.vmem %s310_s25, 1024  ;;  %p2540_p8 = scmp.lt.s32.totalorder %s310_s25, %s310_s25 }
  0x5d   : > { %p2533_p2 = scmp.ne.s32.totalorder %s310_s25, %s2532_s23  ;;  %p2541_p10 = scmp.lt.s32.totalorder %s2532_s23, %s2532_s23 }
  0x5f   : > { %p2535_p3 = pnand %p2533_p2, %p2738_p9  ;;  %p2542_p1 = por %p2541_p10, %p2540_p8 }
  0x61   : > { %p2536_p6 = pneg %p2535_p3 }
  0x63   : > { %p2543_p11 = pnand %p2542_p1, %p2536_p6 }
  0x65   : > { %2546 = shalt.err (!%p2543_p11)
}
  0x66   : > { %2143 = dma.hbm_to_vmem [thread:$0]  (!%p2722_p7), %s3128_s7, 1024, %s310_s25, [#allocation8], %s2624_s22, %s2624_s22, %s2625_s24  }
  0x67   : > { %s2832_s29 = sadd.s32 1, %s2619_s12   ;;  %s31_s19 = sadd.s32 1, %s2615_s11 }
  0x68   : > { %s28_s13 = ssub.s32 %s2619_s12, %s2832_s29  ;;  %p38_p9 = scmp.ne.s32.totalorder %s2615_s11, %s2611_s10 }
  0x69   : > { %p29_p4 = scmp.eq.s32.totalorder %s28_s13, 0  ;;  %p39_p5 = scmp.eq.s32.totalorder %s2619_s12, 0 }
  0x6a   : > { %p2152_p12 = scmp.lt.s32.totalorder %s2619_s12, 8  ;;  %s326_s26 = sand.u32 1, %s2615_s11  }
  0x6b   : > { %s2843_s27 = scalar_select %p29_p4, %s2615_s11, %s31_s19  }
  0x6c   : > { %p40_p13 = por %p39_p5, %p38_p9  ;;  %s1759_s28 = sshll.u32 %s326_s26, 7 }
  0x6d   : > { %s1824_s30 = sshll.u32 %s2619_s12, 11  ;;  %s330_s25 = scalar_lea.vmem [#allocation2], %s1759_s28 }
  0x6e   : > { %s2849_s18 = scalar_lea.hbm %s3121_s0, %s1824_s30  ;;  %s337_s23 = sshll.u32 %s330_s25, 4  ;;  %s2855_s23 = int_to_ptr.vmem [resolvable:$true] %s337_s23 }
  0x6f   : > { %p2851_p7 = pnand %p2152_p12, %p40_p13  ;;  %s2857_s9 = scalar_lea.sflag [#allocation3], %s326_s26 }
  0x70   : > { %s2547_s19 = scalar_lea.hbm %s2849_s18, 2048  ;;  %s2552_s30 = scalar_lea.hbm %s3121_s0, 16384 }
  0x71   : > { %p2548_p0 = scmp.ne.s32.totalorder %s2849_s18, %s2547_s19  ;;  %p2549_p2 = pneg %p2851_p7 }
  0x72   : > { %p2553_p8 = scmp.lt.u32.totalorder %s2849_s18, %s3121_s0  ;;  %p2554_p10 = scmp.lt.u32.totalorder %s2552_s30, %s2547_s19 }
  0x73   : > { %p2550_p3 = pnand %p2549_p2, %p2548_p0  ;;  %p2556_p11 = scmp.lt.u32.totalorder %s2547_s19, %s2849_s18 }
  0x74   : > { %p2555_p1 = por %p2554_p10, %p2553_p8 }
  0x75   : > { %p2551_p6 = pneg %p2550_p3 }
  0x76   : > { %p2557_p9 = por %p2556_p11, %p2555_p1 }
  0x78   : > { %p2558_p4 = pnand %p2557_p9, %p2551_p6 }
  0x7a   : > { %2561 = shalt.err (!%p2558_p4)
}
  0x7b   : > { %s2562_s26 = scalar_lea.vmem %s2855_s23, 2048  ;;  %s2627_s25 = smov [#allocation2]  }
  0x7c   : > { %p2563_p5 = scmp.ne.s32.totalorder %s2855_s23, %s2562_s26  ;;  %s2567_s13 = sshll.u32 %s2627_s25, 4  ;;  %s2568_s13 = int_to_ptr.vmem [resolvable:$false] %s2567_s13 }
  0x7d   : > { %s2569_s28 = scalar_lea.vmem %s2568_s13, 4096  ;;  %p2570_p0 = scmp.lt.s32.totalorder %s2855_s23, %s2568_s13 }
  0x7e   : > { %p2565_p12 = pnand %p2563_p5, %p2549_p2  ;;  %p2571_p3 = scmp.lt.s32.totalorder %s2569_s28, %s2562_s26 }
  0x80   : > { %p2566_p13 = pneg %p2565_p12  ;;  %p2572_p8 = por %p2571_p3, %p2570_p0 }
  0x82   : > { %p2573_p10 = pnand %p2572_p8, %p2566_p13 }
  0x84   : > { %2576 = shalt.err (!%p2573_p10)
}
  0x85   : > { %2147 = dma.hbm_to_vmem [thread:$0]  (!%p2851_p7), %s2849_s18, 2048, %s2855_s23, %s2857_s9, %s2624_s22, %s2624_s22, %s2625_s24  }
  0x86   : > { %p3143_p2 = scmp.ne.s32.totalorder %s3139_s16, 0 }
  0x87   : > { %s351_s19 = sand.u32 (!%p3143_p2), 1, %s2611_s10   ;;  %p3144_p6 = scmp.ne.s32.totalorder (!%p3143_p2), %s3138_s15, 0 }
  0x88   : > { %349 = sbr.rel (%p3143_p2) target bundleno = 1149 (0x47d), region = 56  ;;  %s1763_s30 = sshll.u32 (!%p3143_p2), %s351_s19, 7 }
  0x89   : > { %s352_s17 = scalar_lea.sflag (!%p3143_p2), [#allocation3], %s351_s19  ;;  %s2891_s20 = scalar_lea.vmem (!%p3143_p2), [#allocation2], %s1763_s30 }
  0x8f   : > { %2594 = dma.done.wait (%p3144_p6), %s352_s17, 2048  }
  0x90   : > { %2596 = vsyncadd (%p3144_p6), %s352_s17, 4294965248  ;;  %p3145_p1 = scmp.ne.s32.totalorder %s3137_s14, 0 }
  0x92   : > { %2598 = dma.done.wait (%p3145_p1), [#allocation5], 2048  }
  0x93   : > { %2600 = vsyncadd (%p3145_p1), [#allocation5], 4294965248 }
  0x94   : > { %2602 = dma.done.wait (%p3145_p1), [#allocation8], 2048  }
  0x95   : > { %2604 = vsyncadd (%p3145_p1), [#allocation8], 4294965248  ;;  %v2195_v0 = vld [vmem:[#allocation4] sm:$0xff]   ;;  %v2196_v1 = vld [vmem:[#allocation4 + $0x8] sm:$0xff]   ;;  %s3146_s23 = sadd.s32 4294967295, %s2619_s12   ;;  %s3147_s19 = sld [smem:[#allocation13_spill]] }
  0x96   : > { %1921 = vmatprep.subr.bf16.mxu0 %v2195_v0  ;;  %v2197_v2 = vld [vmem:[#allocation4 + $0x10] sm:$0xff]   ;;  %v2198_v3 = vld [vmem:[#allocation4 + $0x18] sm:$0xff]   ;;  %v2203_v4 = vld [vmem:[%s2891_s20] sm:$0xff]   ;;  %s1768_s21 = sshll.u32 %s3146_s23, 5 }
  0x97   : > { %1922 = vmatpush3.bf16.msra.mxu0 %v2195_v0  ;;  %1937 = vmatprep.mubr.bf16.mxu0 %v2203_v4  ;;  %v2199_v5 = vld [vmem:[#allocation4 + $0x20] sm:$0xff]   ;;  %v2200_v6 = vld [vmem:[#allocation4 + $0x28] sm:$0xff]   ;;  %v2201_v7 = vld [vmem:[#allocation4 + $0x30] sm:$0xff]   ;;  %p408_p7 = scmp.lt.s32.totalorder %s1768_s21, 255 }
  0x98   : > { %1923 = vmatprep.subr.bf16.mxu0 %v2196_v1  ;;  %v2202_v8 = vld [vmem:[#allocation4 + $0x38] sm:$0xff]   ;;  %v2219_v9 = vld [vmem:[#allocation6] sm:$0xff]   ;;  %v2220_v10 = vld [vmem:[#allocation6 + $0x8] sm:$0xff]  }
  0x99   : > { %1969 = vmatprep.subr.bf16.mxu1 %v2219_v9  ;;  %v2221_v11 = vld [vmem:[#allocation6 + $0x10] sm:$0xff]   ;;  %v2204_v12 = vld [vmem:[%s2891_s20 + $0x8] sm:$0xff]   ;;  %v2206_v14 = vld [vmem:[%s2891_s20 + $0x18] sm:$0xff]   ;;  %s3153_s21 = smov (!%p408_p7, %s1768_s21), 255 }
  0x9a   : > { %1970 = vmatpush3.bf16.msra.mxu1 %v2219_v9  ;;  %v2205_v13 = vld [vmem:[%s2891_s20 + $0x10] sm:$0xff]   ;;  %v2207_v15 = vld [vmem:[%s2891_s20 + $0x20] sm:$0xff]   ;;  %v2208_v16 = vld [vmem:[%s2891_s20 + $0x28] sm:$0xff]   ;;  %s1769_s9 = sshll.u32 %s3153_s21, 3 }
  0x9b   : > { %1924 = vmatpush3.bf16.msra.mxu0 %v2196_v1  ;;  %1971 = vmatprep.subr.bf16.mxu1 %v2220_v10  ;;  %v2209_v17 = vld [vmem:[%s2891_s20 + $0x30] sm:$0xff]   ;;  %v2210_v18 = vld [vmem:[%s2891_s20 + $0x38] sm:$0xff]   ;;  %v2211_v19 = vld [vmem:[%s2891_s20 + $0x40] sm:$0xff]   ;;  %s3042_s30 = scalar_lea.vmem %s3147_s19, %s1769_s9 }
  0x9c   : > { %1925 = vmatprep.subr.bf16.mxu0 %v2197_v2  ;;  %v2212_v20 = vld [vmem:[%s2891_s20 + $0x48] sm:$0xff]   ;;  %v2213_v21 = vld [vmem:[%s2891_s20 + $0x50] sm:$0xff]   ;;  %v2214_v22 = vld [vmem:[%s2891_s20 + $0x58] sm:$0xff]  }
  0x9d   : > { %v2215_v23 = vld [vmem:[%s2891_s20 + $0x60] sm:$0xff]   ;;  %v2216_v24 = vld [vmem:[%s2891_s20 + $0x68] sm:$0xff]   ;;  %v2217_v25 = vld [vmem:[%s2891_s20 + $0x70] sm:$0xff]  }
  0x9e   : > { %1972 = vmatpush3.bf16.msra.mxu1 %v2220_v10  ;;  %v2218_v26 = vld [vmem:[%s2891_s20 + $0x78] sm:$0xff]   ;;  %v2223_v28 = vld [vmem:[#allocation6 + $0x20] sm:$0xff]   ;;  %v2224_v29 = vld [vmem:[#allocation6 + $0x28] sm:$0xff]  }
  0x9f   : > { %1926 = vmatpush3.bf16.msra.mxu0 %v2197_v2  ;;  %1973 = vmatprep.subr.bf16.mxu1 %v2221_v11  ;;  %v2222_v27 = vld [vmem:[#allocation6 + $0x18] sm:$0xff]   ;;  %v2225_v30 = vld [vmem:[#allocation6 + $0x30] sm:$0xff]   ;;  %v2227_v32 = vld [vmem:[#allocation7] sm:$0xff]  }
  0xa0   : > { %1927 = vmatprep.subr.bf16.mxu0 %v2198_v3  ;;  %v2226_v31 = vld [vmem:[#allocation6 + $0x38] sm:$0xff]   ;;  %v2228_v33 = vld [vmem:[#allocation7 + $0x8] sm:$0xff]   ;;  %v2229_v34 = vld [vmem:[#allocation7 + $0x10] sm:$0xff]  }
  0xa1   : > { %v2230_v35 = vld [vmem:[#allocation7 + $0x18] sm:$0xff]   ;;  %v2231_v36 = vld [vmem:[#allocation7 + $0x20] sm:$0xff]   ;;  %v2232_v37 = vld [vmem:[#allocation7 + $0x28] sm:$0xff]  }
  0xa2   : > { %1974 = vmatpush3.bf16.msra.mxu1 %v2221_v11  ;;  %v2924_v38 = vld [vmem:[%s3123_s2] ss:$0 sm:$0xff] }
  0xa3   : > { %1928 = vmatpush3.bf16.msra.mxu0 %v2198_v3  ;;  %1975 = vmatprep.subr.bf16.mxu1 %v2222_v27 }
  0xa4   : > { %1929 = vmatprep.subr.bf16.mxu0 %v2199_v5 }
  0xa6   : > { %1976 = vmatpush3.bf16.msra.mxu1 %v2222_v27 }
  0xa7   : > { %1930 = vmatpush3.bf16.msra.mxu0 %v2199_v5  ;;  %1977 = vmatprep.subr.bf16.mxu1 %v2223_v28 }
  0xa8   : > { %1931 = vmatprep.subr.bf16.mxu0 %v2200_v6 }
  0xaa   : > { %1978 = vmatpush3.bf16.msra.mxu1 %v2223_v28 }
  0xab   : > { %1932 = vmatpush3.bf16.msra.mxu0 %v2200_v6  ;;  %1979 = vmatprep.subr.bf16.mxu1 %v2224_v29 }
  0xac   : > { %1933 = vmatprep.subr.bf16.mxu0 %v2201_v7 }
  0xae   : > { %1980 = vmatpush3.bf16.msra.mxu1 %v2224_v29 }
  0xaf   : > { %1934 = vmatpush3.bf16.msra.mxu0 %v2201_v7  ;;  %1981 = vmatprep.subr.bf16.mxu1 %v2225_v30 }
  0xb0   : > { %1935 = vmatprep.subr.bf16.mxu0 %v2202_v8 }
  0xb2   : > { %1982 = vmatpush3.bf16.msra.mxu1 %v2225_v30 }
  0xb3   : > { %1936 = vmatpush3.bf16.msra.mxu0 %v2202_v8  ;;  %1983 = vmatprep.subr.bf16.mxu1 %v2226_v31 }
  0xb4   : > { %2017 = vmatprep.subr.bf16.mxu0 %v2227_v32 }
  0xb6   : > { %1938 = vmatmul.mubr.bf16.vlgmr.msra.gmra.mrb[0].mxu0 %v2204_v12  ;;  %1984 = vmatpush3.bf16.msra.mxu1 %v2226_v31 }
  0xb7   : > { %1941 = vmatprep.mubr.bf16.mxu0 %v2205_v13  ;;  %2018 = vmatpush3.bf16.msra.mxu0 %v2227_v32 }
  0xb8   : > { %2019 = vmatprep.subr.bf16.mxu0 %v2228_v33 }
  0xbb   : > { %2020 = vmatpush3.bf16.msra.mxu0 %v2228_v33 }
  0xbc   : > { %2021 = vmatprep.subr.bf16.mxu0 %v2229_v34 }
  0xbe   : > { %1942 = vmatmul.mubr.bf16.gmra.mrb[4].mxu0 %v2206_v14 }
  0xbf   : > { %1945 = vmatprep.mubr.bf16.mxu0 %v2207_v15  ;;  %2022 = vmatpush3.bf16.msra.mxu0 %v2229_v34 }
  0xc0   : > { %2023 = vmatprep.subr.bf16.mxu0 %v2230_v35 }
  0xc3   : > { %2024 = vmatpush3.bf16.msra.mxu0 %v2230_v35 }
  0xc4   : > { %2025 = vmatprep.subr.bf16.mxu0 %v2231_v36 }
  0xc6   : > { %1946 = vmatmul.mubr.bf16.gmra.mrb[8].mxu0 %v2208_v16 }
  0xc7   : > { %1949 = vmatprep.mubr.bf16.mxu0 %v2209_v17  ;;  %2026 = vmatpush3.bf16.msra.mxu0 %v2231_v36 }
  0xc8   : > { %2027 = vmatprep.subr.bf16.mxu0 %v2232_v37 }
  0xcb   : > { %2028 = vmatpush3.bf16.msra.mxu0 %v2232_v37 }
  0xce   : > { %1950 = vmatmul.mubr.bf16.gmra.mrb[12].mxu0 %v2210_v18 }
  0xcf   : > { %1953 = vmatprep.mubr.bf16.mxu0 %v2211_v19 }
  0xd6   : > { %1954 = vmatmul.mubr.bf16.gmra.mrb[16].mxu0 %v2212_v20 }
  0xd7   : > { %1957 = vmatprep.mubr.bf16.mxu0 %v2213_v21 }
  0xde   : > { %1958 = vmatmul.mubr.bf16.gmra.mrb[20].mxu0 %v2214_v22 }
  0xdf   : > { %1961 = vmatprep.mubr.bf16.mxu0 %v2215_v23 }
  0xe6   : > { %1962 = vmatmul.mubr.bf16.gmra.mrb[24].mxu0 %v2216_v24 }
  0xe7   : > { %1965 = vmatprep.mubr.bf16.mxu0 %v2217_v25 }
  0xee   : > { %1966 = vmatmul.mubr.bf16.gmra.mrb[28].mxu0 %v2218_v26 }
 0x189   : > { %v1939_v39 = vpop.f32.mrb[0].mxu0 }
 0x18a   : > { %v656_v40 = vadd.f32 %v1939_v39, %v2924_v38  ;;  %v647_v41 = vpop.f32.mrb[1].mxu0 }
 0x18b   : > { %v648_v42 = vadd.f32 %v2924_v38, %v647_v41  ;;  %v1940_v43 = vpop.f32.mrb[2].mxu0 }
 0x18c   : > { %2243 = vtanh.f32 %v656_v40  ;;  %v659_v44 = vadd.f32 %v1940_v43, %v2924_v38  ;;  %v650_v45 = vpop.f32.mrb[3].mxu0 }
 0x18d   : > { %2245 = vtanh.f32 %v648_v42  ;;  %v651_v46 = vadd.f32 %v2924_v38, %v650_v45 }
 0x18e   : > { %2247 = vtanh.f32 %v659_v44 }
 0x18f   : > { %2249 = vtanh.f32 %v651_v46 }
 0x191   : > { %v1943_v47 = vpop.f32.mrb[4].mxu0 }
 0x192   : > { %v672_v48 = vadd.f32 %v1943_v47, %v2924_v38  ;;  %v663_v49 = vpop.f32.mrb[5].mxu0 }
 0x193   : > { %v664_v50 = vadd.f32 %v2924_v38, %v663_v49  ;;  %v1944_v51 = vpop.f32.mrb[6].mxu0 }
 0x194   : > { %2251 = vtanh.f32 %v672_v48  ;;  %v675_v52 = vadd.f32 %v1944_v51, %v2924_v38  ;;  %v666_v53 = vpop.f32.mrb[7].mxu0 }
 0x195   : > { %2253 = vtanh.f32 %v664_v50  ;;  %v667_v54 = vadd.f32 %v2924_v38, %v666_v53 }
 0x196   : > { %v2244_v55 = vpop.eup %2243  ;;  %2255 = vtanh.f32 %v675_v52 }
 0x197   : > { %v2246_v56 = vpop.eup %2245  ;;  %2257 = vtanh.f32 %v667_v54 }
 0x198   : > { %v2248_v57 = vpop.eup %2247 }
 0x199   : > { %v2250_v58 = vpop.eup %2249  ;;  %v1947_v59 = vpop.f32.mrb[8].mxu0  ;;  %v807_v60 = vpack.c.bf16 %v2248_v57, %v2244_v55 }
 0x19a   : > { %v688_v61 = vadd.f32 %v1947_v59, %v2924_v38  ;;  %v679_v62 = vpop.f32.mrb[9].mxu0  ;;  %v806_v63 = vpack.c.bf16 %v2250_v58, %v2246_v56 }
 0x19b   : > { %v680_v0 = vadd.f32 %v2924_v38, %v679_v62  ;;  %v1948_v1 = vpop.f32.mrb[10].mxu0 }
 0x19c   : > { %2259 = vtanh.f32 %v688_v61  ;;  %v691_v2 = vadd.f32 %v1948_v1, %v2924_v38  ;;  %v682_v3 = vpop.f32.mrb[11].mxu0  ;;  %1985 = vmatprep.mubr.bf16.mxu1 %v806_v63 }
 0x19d   : > { %2261 = vtanh.f32 %v680_v0  ;;  %v683_v4 = vadd.f32 %v2924_v38, %v682_v3  ;;  %1986 = vmatmul.mubr.bf16.vlgmr.msra.gmra.mrb[0].mxu1 %v807_v60 }
 0x19e   : > { %v2252_v5 = vpop.eup %2251  ;;  %2263 = vtanh.f32 %v691_v2 }
 0x19f   : > { %v2254_v6 = vpop.eup %2253  ;;  %2265 = vtanh.f32 %v683_v4 }
 0x1a0   : > { %v2256_v7 = vpop.eup %2255 }
 0x1a1   : > { %v2258_v8 = vpop.eup %2257  ;;  %v1951_v9 = vpop.f32.mrb[12].mxu0  ;;  %v809_v10 = vpack.c.bf16 %v2256_v7, %v2252_v5 }
 0x1a2   : > { %v704_v11 = vadd.f32 %v1951_v9, %v2924_v38  ;;  %v695_v12 = vpop.f32.mrb[13].mxu0  ;;  %v808_v13 = vpack.c.bf16 %v2258_v8, %v2254_v6 }
 0x1a3   : > { %v696_v14 = vadd.f32 %v2924_v38, %v695_v12  ;;  %v1952_v15 = vpop.f32.mrb[14].mxu0 }
 0x1a4   : > { %2267 = vtanh.f32 %v704_v11  ;;  %v707_v16 = vadd.f32 %v1952_v15, %v2924_v38  ;;  %v698_v17 = vpop.f32.mrb[15].mxu0  ;;  %1989 = vmatprep.mubr.bf16.mxu1 %v808_v13 }
 0x1a5   : > { %2269 = vtanh.f32 %v696_v14  ;;  %v699_v18 = vadd.f32 %v2924_v38, %v698_v17  ;;  %1990 = vmatmul.mubr.bf16.gmra.mrb[4].mxu1 %v809_v10 }
 0x1a6   : > { %v2260_v19 = vpop.eup %2259  ;;  %2271 = vtanh.f32 %v707_v16 }
 0x1a7   : > { %v2262_v20 = vpop.eup %2261  ;;  %2273 = vtanh.f32 %v699_v18 }
 0x1a8   : > { %v2264_v21 = vpop.eup %2263 }
 0x1a9   : > { %v2266_v22 = vpop.eup %2265  ;;  %v1955_v23 = vpop.f32.mrb[16].mxu0  ;;  %v811_v24 = vpack.c.bf16 %v2264_v21, %v2260_v19 }
 0x1aa   : > { %v720_v25 = vadd.f32 %v1955_v23, %v2924_v38  ;;  %v711_v26 = vpop.f32.mrb[17].mxu0  ;;  %v810_v27 = vpack.c.bf16 %v2266_v22, %v2262_v20 }
 0x1ab   : > { %v712_v28 = vadd.f32 %v2924_v38, %v711_v26  ;;  %v1956_v29 = vpop.f32.mrb[18].mxu0  ;;  %v2236_v26 = vld [vmem:[#allocation9 + $0x8] sm:$0xff]  }
 0x1ac   : > { %2275 = vtanh.f32 %v720_v25  ;;  %v723_v30 = vadd.f32 %v1956_v29, %v2924_v38  ;;  %v714_v31 = vpop.f32.mrb[19].mxu0  ;;  %1993 = vmatprep.mubr.bf16.mxu1 %v810_v27  ;;  %v2235_v25 = vld [vmem:[#allocation9] sm:$0xff]   ;;  %v2237_v27 = vld [vmem:[#allocation9 + $0x10] sm:$0xff]  }
 0x1ad   : > { %2277 = vtanh.f32 %v712_v28  ;;  %v715_v32 = vadd.f32 %v2924_v38, %v714_v31  ;;  %1994 = vmatmul.mubr.bf16.gmra.mrb[8].mxu1 %v811_v24  ;;  %v2234_v24 = vld [vmem:[#allocation7 + $0x38] sm:$0xff]   ;;  %2065 = vmatprep.subr.bf16.mxu1 %v2235_v25  ;;  %v2239_v29 = vld [vmem:[#allocation9 + $0x20] sm:$0xff]  }
 0x1ae   : > { %v2268_v33 = vpop.eup %2267  ;;  %2279 = vtanh.f32 %v723_v30  ;;  %2066 = vmatpush3.bf16.msra.mxu1 %v2235_v25  ;;  %v2238_v28 = vld [vmem:[#allocation9 + $0x18] sm:$0xff]   ;;  %v2240_v30 = vld [vmem:[#allocation9 + $0x28] sm:$0xff]   ;;  %v2961_v31 = vld [vmem:[%s3125_s4] ss:$0 sm:$0xff] }
 0x1af   : > { %v2270_v34 = vpop.eup %2269  ;;  %2281 = vtanh.f32 %v715_v32  ;;  %2067 = vmatprep.subr.bf16.mxu1 %v2236_v26 }
 0x1b0   : > { %v2272_v35 = vpop.eup %2271 }
 0x1b1   : > { %v2274_v36 = vpop.eup %2273  ;;  %v1959_v37 = vpop.f32.mrb[20].mxu0  ;;  %v813_v39 = vpack.c.bf16 %v2272_v35, %v2268_v33 }
 0x1b2   : > { %v736_v40 = vadd.f32 %v1959_v37, %v2924_v38  ;;  %v727_v41 = vpop.f32.mrb[21].mxu0  ;;  %v812_v42 = vpack.c.bf16 %v2274_v36, %v2270_v34  ;;  %2068 = vmatpush3.bf16.msra.mxu1 %v2236_v26 }
 0x1b3   : > { %v728_v43 = vadd.f32 %v2924_v38, %v727_v41  ;;  %v1960_v44 = vpop.f32.mrb[22].mxu0  ;;  %2069 = vmatprep.subr.bf16.mxu1 %v2237_v27 }
 0x1b4   : > { %2283 = vtanh.f32 %v736_v40  ;;  %v739_v45 = vadd.f32 %v1960_v44, %v2924_v38  ;;  %v730_v46 = vpop.f32.mrb[23].mxu0  ;;  %1997 = vmatprep.mubr.bf16.mxu1 %v812_v42 }
 0x1b5   : > { %2285 = vtanh.f32 %v728_v43  ;;  %v731_v47 = vadd.f32 %v2924_v38, %v730_v46  ;;  %1998 = vmatmul.mubr.bf16.gmra.mrb[12].mxu1 %v813_v39 }
 0x1b6   : > { %v2276_v48 = vpop.eup %2275  ;;  %2287 = vtanh.f32 %v739_v45  ;;  %2070 = vmatpush3.bf16.msra.mxu1 %v2237_v27 }
 0x1b7   : > { %v2278_v49 = vpop.eup %2277  ;;  %2289 = vtanh.f32 %v731_v47  ;;  %2071 = vmatprep.subr.bf16.mxu1 %v2238_v28 }
 0x1b8   : > { %v2280_v50 = vpop.eup %2279 }
 0x1b9   : > { %v2282_v51 = vpop.eup %2281  ;;  %v1963_v52 = vpop.f32.mrb[24].mxu0  ;;  %v815_v53 = vpack.c.bf16 %v2280_v50, %v2276_v48 }
 0x1ba   : > { %v752_v54 = vadd.f32 %v1963_v52, %v2924_v38  ;;  %v743_v55 = vpop.f32.mrb[25].mxu0  ;;  %v814_v56 = vpack.c.bf16 %v2282_v51, %v2278_v49  ;;  %2072 = vmatpush3.bf16.msra.mxu1 %v2238_v28 }
 0x1bb   : > { %v744_v57 = vadd.f32 %v2924_v38, %v743_v55  ;;  %v1964_v58 = vpop.f32.mrb[26].mxu0  ;;  %2073 = vmatprep.subr.bf16.mxu1 %v2239_v29 }
 0x1bc   : > { %2291 = vtanh.f32 %v752_v54  ;;  %v755_v59 = vadd.f32 %v1964_v58, %v2924_v38  ;;  %v746_v60 = vpop.f32.mrb[27].mxu0  ;;  %2001 = vmatprep.mubr.bf16.mxu1 %v814_v56 }
 0x1bd   : > { %2293 = vtanh.f32 %v744_v57  ;;  %v747_v61 = vadd.f32 %v2924_v38, %v746_v60  ;;  %2002 = vmatmul.mubr.bf16.gmra.mrb[16].mxu1 %v815_v53 }
 0x1be   : > { %v2284_v62 = vpop.eup %2283  ;;  %2295 = vtanh.f32 %v755_v59  ;;  %2074 = vmatpush3.bf16.msra.mxu1 %v2239_v29 }
 0x1bf   : > { %v2286_v63 = vpop.eup %2285  ;;  %2297 = vtanh.f32 %v747_v61  ;;  %2075 = vmatprep.subr.bf16.mxu1 %v2240_v30 }
 0x1c0   : > { %v2288_v0 = vpop.eup %2287 }
 0x1c1   : > { %v2290_v1 = vpop.eup %2289  ;;  %v1967_v2 = vpop.f32.mrb[28].mxu0  ;;  %v817_v3 = vpack.c.bf16 %v2288_v0, %v2284_v62 }
 0x1c2   : > { %v768_v4 = vadd.f32 %v1967_v2, %v2924_v38  ;;  %v759_v5 = vpop.f32.mrb[29].mxu0  ;;  %v816_v6 = vpack.c.bf16 %v2290_v1, %v2286_v63  ;;  %2076 = vmatpush3.bf16.msra.mxu1 %v2240_v30 }
 0x1c3   : > { %v760_v7 = vadd.f32 %v2924_v38, %v759_v5  ;;  %v1968_v8 = vpop.f32.mrb[30].mxu0 }
 0x1c4   : > { %2299 = vtanh.f32 %v768_v4  ;;  %v771_v9 = vadd.f32 %v1968_v8, %v2924_v38  ;;  %v762_v10 = vpop.f32.mrb[31].mxu0  ;;  %2005 = vmatprep.mubr.bf16.mxu1 %v816_v6 }
 0x1c5   : > { %2301 = vtanh.f32 %v760_v7  ;;  %v763_v11 = vadd.f32 %v2924_v38, %v762_v10  ;;  %2006 = vmatmul.mubr.bf16.gmra.mrb[20].mxu1 %v817_v3  ;;  %v2233_v38 = vld [vmem:[#allocation7 + $0x30] sm:$0xff]  }
 0x1c6   : > { %v2292_v12 = vpop.eup %2291  ;;  %2303 = vtanh.f32 %v771_v9  ;;  %2029 = vmatprep.subr.bf16.mxu0 %v2233_v38 }
 0x1c7   : > { %v2294_v13 = vpop.eup %2293  ;;  %2305 = vtanh.f32 %v763_v11  ;;  %2030 = vmatpush3.bf16.msra.mxu0 %v2233_v38 }
 0x1c8   : > { %v2296_v14 = vpop.eup %2295  ;;  %2031 = vmatprep.subr.bf16.mxu0 %v2234_v24 }
 0x1c9   : > { %v2298_v15 = vpop.eup %2297  ;;  %v819_v16 = vpack.c.bf16 %v2296_v14, %v2292_v12 }
 0x1ca   : > { %v818_v17 = vpack.c.bf16 %v2298_v15, %v2294_v13 }
 0x1cb   : > { %2032 = vmatpush3.bf16.msra.mxu0 %v2234_v24 }
 0x1cc   : > { %2009 = vmatprep.mubr.bf16.mxu1 %v818_v17 }
 0x1cd   : > { %2010 = vmatmul.mubr.bf16.gmra.mrb[24].mxu1 %v819_v16 }
 0x1ce   : > { %v2300_v18 = vpop.eup %2299 }
 0x1cf   : > { %v2302_v19 = vpop.eup %2301 }
 0x1d0   : > { %v2304_v20 = vpop.eup %2303 }
 0x1d1   : > { %v2306_v21 = vpop.eup %2305  ;;  %v821_v22 = vpack.c.bf16 %v2304_v20, %v2300_v18 }
 0x1d2   : > { %v820_v23 = vpack.c.bf16 %v2306_v21, %v2302_v19 }
 0x1d4   : > { %2013 = vmatprep.mubr.bf16.mxu1 %v820_v23 }
 0x1d5   : > { %2014 = vmatmul.mubr.bf16.gmra.mrb[28].mxu1 %v821_v22 }
 0x270   : > { %v1987_v32 = vpop.f32.mrb[0].mxu1 }
 0x271   : > { %v936_v33 = vadd.f32 %v1987_v32, %v2961_v31  ;;  %v927_v34 = vpop.f32.mrb[1].mxu1 }
 0x272   : > { %v928_v35 = vadd.f32 %v2961_v31, %v927_v34  ;;  %v1988_v36 = vpop.f32.mrb[2].mxu1 }
 0x273   : > { %2307 = vtanh.f32 %v936_v33  ;;  %v939_v37 = vadd.f32 %v1988_v36, %v2961_v31  ;;  %v930_v39 = vpop.f32.mrb[3].mxu1 }
 0x274   : > { %2309 = vtanh.f32 %v928_v35  ;;  %v931_v40 = vadd.f32 %v2961_v31, %v930_v39 }
 0x275   : > { %2311 = vtanh.f32 %v939_v37 }
 0x276   : > { %2313 = vtanh.f32 %v931_v40 }
 0x278   : > { %v1991_v41 = vpop.f32.mrb[4].mxu1 }
 0x279   : > { %v952_v42 = vadd.f32 %v1991_v41, %v2961_v31  ;;  %v943_v43 = vpop.f32.mrb[5].mxu1 }
 0x27a   : > { %v944_v44 = vadd.f32 %v2961_v31, %v943_v43  ;;  %v1992_v45 = vpop.f32.mrb[6].mxu1 }
 0x27b   : > { %2315 = vtanh.f32 %v952_v42  ;;  %v955_v46 = vadd.f32 %v1992_v45, %v2961_v31  ;;  %v946_v47 = vpop.f32.mrb[7].mxu1 }
 0x27c   : > { %2317 = vtanh.f32 %v944_v44  ;;  %v947_v48 = vadd.f32 %v2961_v31, %v946_v47 }
 0x27d   : > { %v2308_v49 = vpop.eup %2307  ;;  %2319 = vtanh.f32 %v955_v46 }
 0x27e   : > { %v2310_v50 = vpop.eup %2309  ;;  %2321 = vtanh.f32 %v947_v48 }
 0x27f   : > { %v2312_v51 = vpop.eup %2311 }
 0x280   : > { %v2314_v52 = vpop.eup %2313  ;;  %v1995_v53 = vpop.f32.mrb[8].mxu1  ;;  %v1087_v54 = vpack.c.bf16 %v2312_v51, %v2308_v49 }
 0x281   : > { %v968_v55 = vadd.f32 %v1995_v53, %v2961_v31  ;;  %v959_v56 = vpop.f32.mrb[9].mxu1  ;;  %v1086_v57 = vpack.c.bf16 %v2314_v52, %v2310_v50 }
 0x282   : > { %v960_v58 = vadd.f32 %v2961_v31, %v959_v56  ;;  %v1996_v59 = vpop.f32.mrb[10].mxu1 }
 0x283   : > { %2323 = vtanh.f32 %v968_v55  ;;  %v971_v60 = vadd.f32 %v1996_v59, %v2961_v31  ;;  %v962_v61 = vpop.f32.mrb[11].mxu1  ;;  %2033 = vmatprep.mubr.bf16.mxu0 %v1086_v57 }
 0x284   : > { %2325 = vtanh.f32 %v960_v58  ;;  %v963_v62 = vadd.f32 %v2961_v31, %v962_v61  ;;  %2034 = vmatmul.mubr.bf16.vlgmr.msra.gmra.mrb[32].mxu0 %v1087_v54 }
 0x285   : > { %v2316_v63 = vpop.eup %2315  ;;  %2327 = vtanh.f32 %v971_v60 }
 0x286   : > { %v2318_v0 = vpop.eup %2317  ;;  %2329 = vtanh.f32 %v963_v62 }
 0x287   : > { %v2320_v1 = vpop.eup %2319 }
 0x288   : > { %v2322_v2 = vpop.eup %2321  ;;  %v1999_v3 = vpop.f32.mrb[12].mxu1  ;;  %v1089_v4 = vpack.c.bf16 %v2320_v1, %v2316_v63 }
 0x289   : > { %v984_v5 = vadd.f32 %v1999_v3, %v2961_v31  ;;  %v975_v6 = vpop.f32.mrb[13].mxu1  ;;  %v1088_v7 = vpack.c.bf16 %v2322_v2, %v2318_v0 }
 0x28a   : > { %v976_v8 = vadd.f32 %v2961_v31, %v975_v6  ;;  %v2000_v9 = vpop.f32.mrb[14].mxu1 }
 0x28b   : > { %2331 = vtanh.f32 %v984_v5  ;;  %v987_v10 = vadd.f32 %v2000_v9, %v2961_v31  ;;  %v978_v11 = vpop.f32.mrb[15].mxu1  ;;  %2037 = vmatprep.mubr.bf16.mxu0 %v1088_v7 }
 0x28c   : > { %2333 = vtanh.f32 %v976_v8  ;;  %v979_v12 = vadd.f32 %v2961_v31, %v978_v11  ;;  %2038 = vmatmul.mubr.bf16.gmra.mrb[36].mxu0 %v1089_v4 }
 0x28d   : > { %v2324_v13 = vpop.eup %2323  ;;  %2335 = vtanh.f32 %v987_v10 }
 0x28e   : > { %v2326_v14 = vpop.eup %2325  ;;  %2337 = vtanh.f32 %v979_v12 }
 0x28f   : > { %v2328_v15 = vpop.eup %2327 }
 0x290   : > { %v2330_v16 = vpop.eup %2329  ;;  %v2003_v17 = vpop.f32.mrb[16].mxu1  ;;  %v1091_v18 = vpack.c.bf16 %v2328_v15, %v2324_v13 }
 0x291   : > { %v1000_v19 = vadd.f32 %v2003_v17, %v2961_v31  ;;  %v991_v20 = vpop.f32.mrb[17].mxu1  ;;  %v1090_v21 = vpack.c.bf16 %v2330_v16, %v2326_v14 }
 0x292   : > { %v992_v22 = vadd.f32 %v2961_v31, %v991_v20  ;;  %v2004_v23 = vpop.f32.mrb[18].mxu1 }
 0x293   : > { %2339 = vtanh.f32 %v1000_v19  ;;  %v1003_v38 = vadd.f32 %v2004_v23, %v2961_v31  ;;  %v994_v24 = vpop.f32.mrb[19].mxu1  ;;  %2041 = vmatprep.mubr.bf16.mxu0 %v1090_v21  ;;  %v2998_v19 = vld [vmem:[%s3127_s6] ss:$0 sm:$0xff] }
 0x294   : > { %2341 = vtanh.f32 %v992_v22  ;;  %v995_v25 = vadd.f32 %v2961_v31, %v994_v24  ;;  %2042 = vmatmul.mubr.bf16.gmra.mrb[40].mxu0 %v1091_v18  ;;  %v2242_v18 = vld [vmem:[#allocation9 + $0x38] sm:$0xff]  }
 0x295   : > { %v2332_v26 = vpop.eup %2331  ;;  %2343 = vtanh.f32 %v1003_v38 }
 0x296   : > { %v2334_v27 = vpop.eup %2333  ;;  %2345 = vtanh.f32 %v995_v25 }
 0x297   : > { %v2336_v28 = vpop.eup %2335 }
 0x298   : > { %v2338_v29 = vpop.eup %2337  ;;  %v2007_v30 = vpop.f32.mrb[20].mxu1  ;;  %v1093_v32 = vpack.c.bf16 %v2336_v28, %v2332_v26 }
 0x299   : > { %v1016_v33 = vadd.f32 %v2007_v30, %v2961_v31  ;;  %v1007_v34 = vpop.f32.mrb[21].mxu1  ;;  %v1092_v35 = vpack.c.bf16 %v2338_v29, %v2334_v27 }
 0x29a   : > { %v1008_v36 = vadd.f32 %v2961_v31, %v1007_v34  ;;  %v2008_v37 = vpop.f32.mrb[22].mxu1 }
 0x29b   : > { %2347 = vtanh.f32 %v1016_v33  ;;  %v1019_v39 = vadd.f32 %v2008_v37, %v2961_v31  ;;  %v1010_v40 = vpop.f32.mrb[23].mxu1  ;;  %2045 = vmatprep.mubr.bf16.mxu0 %v1092_v35 }
 0x29c   : > { %2349 = vtanh.f32 %v1008_v36  ;;  %v1011_v41 = vadd.f32 %v2961_v31, %v1010_v40  ;;  %2046 = vmatmul.mubr.bf16.gmra.mrb[44].mxu0 %v1093_v32 }
 0x29d   : > { %v2340_v42 = vpop.eup %2339  ;;  %2351 = vtanh.f32 %v1019_v39 }
 0x29e   : > { %v2342_v43 = vpop.eup %2341  ;;  %2353 = vtanh.f32 %v1011_v41 }
 0x29f   : > { %v2344_v44 = vpop.eup %2343 }
 0x2a0   : > { %v2346_v45 = vpop.eup %2345  ;;  %v2011_v46 = vpop.f32.mrb[24].mxu1  ;;  %v1095_v47 = vpack.c.bf16 %v2344_v44, %v2340_v42 }
 0x2a1   : > { %v1032_v48 = vadd.f32 %v2011_v46, %v2961_v31  ;;  %v1023_v49 = vpop.f32.mrb[25].mxu1  ;;  %v1094_v50 = vpack.c.bf16 %v2346_v45, %v2342_v43 }
 0x2a2   : > { %v1024_v51 = vadd.f32 %v2961_v31, %v1023_v49  ;;  %v2012_v52 = vpop.f32.mrb[26].mxu1 }
 0x2a3   : > { %2355 = vtanh.f32 %v1032_v48  ;;  %v1035_v53 = vadd.f32 %v2012_v52, %v2961_v31  ;;  %v1026_v54 = vpop.f32.mrb[27].mxu1  ;;  %2049 = vmatprep.mubr.bf16.mxu0 %v1094_v50 }
 0x2a4   : > { %2357 = vtanh.f32 %v1024_v51  ;;  %v1027_v55 = vadd.f32 %v2961_v31, %v1026_v54  ;;  %2050 = vmatmul.mubr.bf16.gmra.mrb[48].mxu0 %v1095_v47 }
 0x2a5   : > { %v2348_v56 = vpop.eup %2347  ;;  %2359 = vtanh.f32 %v1035_v53 }
 0x2a6   : > { %v2350_v57 = vpop.eup %2349  ;;  %2361 = vtanh.f32 %v1027_v55 }
 0x2a7   : > { %v2352_v58 = vpop.eup %2351 }
 0x2a8   : > { %v2354_v59 = vpop.eup %2353  ;;  %v2015_v60 = vpop.f32.mrb[28].mxu1  ;;  %v1097_v61 = vpack.c.bf16 %v2352_v58, %v2348_v56 }
 0x2a9   : > { %v1048_v62 = vadd.f32 %v2015_v60, %v2961_v31  ;;  %v1039_v63 = vpop.f32.mrb[29].mxu1  ;;  %v1096_v0 = vpack.c.bf16 %v2354_v59, %v2350_v57 }
 0x2aa   : > { %v1040_v1 = vadd.f32 %v2961_v31, %v1039_v63  ;;  %v2016_v2 = vpop.f32.mrb[30].mxu1 }
 0x2ab   : > { %2363 = vtanh.f32 %v1048_v62  ;;  %v1051_v3 = vadd.f32 %v2016_v2, %v2961_v31  ;;  %v1042_v4 = vpop.f32.mrb[31].mxu1  ;;  %2053 = vmatprep.mubr.bf16.mxu0 %v1096_v0 }
 0x2ac   : > { %2365 = vtanh.f32 %v1040_v1  ;;  %v1043_v5 = vadd.f32 %v2961_v31, %v1042_v4  ;;  %2054 = vmatmul.mubr.bf16.gmra.mrb[52].mxu0 %v1097_v61  ;;  %v2241_v31 = vld [vmem:[#allocation9 + $0x30] sm:$0xff]  }
 0x2ad   : > { %v2356_v6 = vpop.eup %2355  ;;  %2367 = vtanh.f32 %v1051_v3  ;;  %2077 = vmatprep.subr.bf16.mxu1 %v2241_v31 }
 0x2ae   : > { %v2358_v7 = vpop.eup %2357  ;;  %2369 = vtanh.f32 %v1043_v5  ;;  %2078 = vmatpush3.bf16.msra.mxu1 %v2241_v31 }
 0x2af   : > { %v2360_v8 = vpop.eup %2359  ;;  %2079 = vmatprep.subr.bf16.mxu1 %v2242_v18 }
 0x2b0   : > { %v2362_v9 = vpop.eup %2361  ;;  %v1099_v10 = vpack.c.bf16 %v2360_v8, %v2356_v6 }
 0x2b1   : > { %v1098_v11 = vpack.c.bf16 %v2362_v9, %v2358_v7 }
 0x2b2   : > { %2080 = vmatpush3.bf16.msra.mxu1 %v2242_v18 }
 0x2b3   : > { %2057 = vmatprep.mubr.bf16.mxu0 %v1098_v11 }
 0x2b4   : > { %2058 = vmatmul.mubr.bf16.gmra.mrb[56].mxu0 %v1099_v10 }
 0x2b5   : > { %v2364_v12 = vpop.eup %2363 }
 0x2b6   : > { %v2366_v13 = vpop.eup %2365 }
 0x2b7   : > { %v2368_v14 = vpop.eup %2367 }
 0x2b8   : > { %v2370_v15 = vpop.eup %2369  ;;  %v1101_v16 = vpack.c.bf16 %v2368_v14, %v2364_v12 }
 0x2b9   : > { %v1100_v17 = vpack.c.bf16 %v2370_v15, %v2366_v13 }
 0x2bb   : > { %2061 = vmatprep.mubr.bf16.mxu0 %v1100_v17 }
 0x2bc   : > { %2062 = vmatmul.mubr.bf16.gmra.mrb[60].mxu0 %v1101_v16 }
 0x357   : > { %v2035_v20 = vpop.f32.mrb[32].mxu0 }
 0x358   : > { %v1216_v21 = vadd.f32 %v2035_v20, %v2998_v19  ;;  %v1207_v22 = vpop.f32.mrb[33].mxu0 }
 0x359   : > { %v1208_v23 = vadd.f32 %v2998_v19, %v1207_v22  ;;  %v2036_v38 = vpop.f32.mrb[34].mxu0 }
 0x35a   : > { %2371 = vtanh.f32 %v1216_v21  ;;  %v1219_v24 = vadd.f32 %v2036_v38, %v2998_v19  ;;  %v1210_v25 = vpop.f32.mrb[35].mxu0 }
 0x35b   : > { %2373 = vtanh.f32 %v1208_v23  ;;  %v1211_v26 = vadd.f32 %v2998_v19, %v1210_v25 }
 0x35c   : > { %2375 = vtanh.f32 %v1219_v24 }
 0x35d   : > { %2377 = vtanh.f32 %v1211_v26 }
 0x35f   : > { %v2039_v27 = vpop.f32.mrb[36].mxu0 }
 0x360   : > { %v1232_v28 = vadd.f32 %v2039_v27, %v2998_v19  ;;  %v1223_v29 = vpop.f32.mrb[37].mxu0 }
 0x361   : > { %v1224_v30 = vadd.f32 %v2998_v19, %v1223_v29  ;;  %v2040_v32 = vpop.f32.mrb[38].mxu0 }
 0x362   : > { %2379 = vtanh.f32 %v1232_v28  ;;  %v1235_v33 = vadd.f32 %v2040_v32, %v2998_v19  ;;  %v1226_v34 = vpop.f32.mrb[39].mxu0 }
 0x363   : > { %2381 = vtanh.f32 %v1224_v30  ;;  %v1227_v35 = vadd.f32 %v2998_v19, %v1226_v34 }
 0x364   : > { %v2372_v36 = vpop.eup %2371  ;;  %2383 = vtanh.f32 %v1235_v33 }
 0x365   : > { %v2374_v37 = vpop.eup %2373  ;;  %2385 = vtanh.f32 %v1227_v35 }
 0x366   : > { %v2376_v39 = vpop.eup %2375 }
 0x367   : > { %v2378_v40 = vpop.eup %2377  ;;  %v2043_v41 = vpop.f32.mrb[40].mxu0  ;;  %v1367_v42 = vpack.c.bf16 %v2376_v39, %v2372_v36 }
 0x368   : > { %v1248_v43 = vadd.f32 %v2043_v41, %v2998_v19  ;;  %v1239_v44 = vpop.f32.mrb[41].mxu0  ;;  %v1366_v45 = vpack.c.bf16 %v2378_v40, %v2374_v37 }
 0x369   : > { %v1240_v46 = vadd.f32 %v2998_v19, %v1239_v44  ;;  %v2044_v47 = vpop.f32.mrb[42].mxu0 }
 0x36a   : > { %2387 = vtanh.f32 %v1248_v43  ;;  %v1251_v48 = vadd.f32 %v2044_v47, %v2998_v19  ;;  %v1242_v49 = vpop.f32.mrb[43].mxu0  ;;  %2081 = vmatprep.mubr.bf16.mxu1 %v1366_v45 }
 0x36b   : > { %2389 = vtanh.f32 %v1240_v46  ;;  %v1243_v50 = vadd.f32 %v2998_v19, %v1242_v49  ;;  %2082 = vmatmul.mubr.bf16.vlgmr.msra.gmra.mrb[32].mxu1 %v1367_v42 }
 0x36c   : > { %v2380_v51 = vpop.eup %2379  ;;  %2391 = vtanh.f32 %v1251_v48 }
 0x36d   : > { %v2382_v52 = vpop.eup %2381  ;;  %2393 = vtanh.f32 %v1243_v50 }
 0x36e   : > { %v2384_v53 = vpop.eup %2383 }
 0x36f   : > { %v2386_v54 = vpop.eup %2385  ;;  %v2047_v55 = vpop.f32.mrb[44].mxu0  ;;  %v1369_v56 = vpack.c.bf16 %v2384_v53, %v2380_v51 }
 0x370   : > { %v1264_v57 = vadd.f32 %v2047_v55, %v2998_v19  ;;  %v1255_v58 = vpop.f32.mrb[45].mxu0  ;;  %v1368_v59 = vpack.c.bf16 %v2386_v54, %v2382_v52 }
 0x371   : > { %v1256_v60 = vadd.f32 %v2998_v19, %v1255_v58  ;;  %v2048_v61 = vpop.f32.mrb[46].mxu0 }
 0x372   : > { %2395 = vtanh.f32 %v1264_v57  ;;  %v1267_v62 = vadd.f32 %v2048_v61, %v2998_v19  ;;  %v1258_v63 = vpop.f32.mrb[47].mxu0  ;;  %2085 = vmatprep.mubr.bf16.mxu1 %v1368_v59 }
 0x373   : > { %2397 = vtanh.f32 %v1256_v60  ;;  %v1259_v0 = vadd.f32 %v2998_v19, %v1258_v63  ;;  %2086 = vmatmul.mubr.bf16.gmra.mrb[36].mxu1 %v1369_v56 }
 0x374   : > { %v2388_v1 = vpop.eup %2387  ;;  %2399 = vtanh.f32 %v1267_v62 }
 0x375   : > { %v2390_v2 = vpop.eup %2389  ;;  %2401 = vtanh.f32 %v1259_v0 }
 0x376   : > { %v2392_v3 = vpop.eup %2391 }
 0x377   : > { %v2394_v4 = vpop.eup %2393  ;;  %v2051_v5 = vpop.f32.mrb[48].mxu0  ;;  %v1371_v6 = vpack.c.bf16 %v2392_v3, %v2388_v1 }
 0x378   : > { %v1280_v7 = vadd.f32 %v2051_v5, %v2998_v19  ;;  %v1271_v8 = vpop.f32.mrb[49].mxu0  ;;  %v1370_v9 = vpack.c.bf16 %v2394_v4, %v2390_v2 }
 0x379   : > { %v1272_v10 = vadd.f32 %v2998_v19, %v1271_v8  ;;  %v2052_v11 = vpop.f32.mrb[50].mxu0 }
 0x37a   : > { %2403 = vtanh.f32 %v1280_v7  ;;  %v1283_v12 = vadd.f32 %v2052_v11, %v2998_v19  ;;  %v1274_v13 = vpop.f32.mrb[51].mxu0  ;;  %2089 = vmatprep.mubr.bf16.mxu1 %v1370_v9 }
 0x37b   : > { %2405 = vtanh.f32 %v1272_v10  ;;  %v1275_v14 = vadd.f32 %v2998_v19, %v1274_v13  ;;  %2090 = vmatmul.mubr.bf16.gmra.mrb[40].mxu1 %v1371_v6 }
 0x37c   : > { %v2396_v15 = vpop.eup %2395  ;;  %2407 = vtanh.f32 %v1283_v12 }
 0x37d   : > { %v2398_v16 = vpop.eup %2397  ;;  %2409 = vtanh.f32 %v1275_v14 }
 0x37e   : > { %v2400_v17 = vpop.eup %2399 }
 0x37f   : > { %v2402_v31 = vpop.eup %2401  ;;  %v2055_v18 = vpop.f32.mrb[52].mxu0  ;;  %v1373_v20 = vpack.c.bf16 %v2400_v17, %v2396_v15 }
 0x380   : > { %v1296_v21 = vadd.f32 %v2055_v18, %v2998_v19  ;;  %v1287_v22 = vpop.f32.mrb[53].mxu0  ;;  %v1372_v23 = vpack.c.bf16 %v2402_v31, %v2398_v16 }
 0x381   : > { %v1288_v38 = vadd.f32 %v2998_v19, %v1287_v22  ;;  %v2056_v24 = vpop.f32.mrb[54].mxu0 }
 0x382   : > { %2411 = vtanh.f32 %v1296_v21  ;;  %v1299_v25 = vadd.f32 %v2056_v24, %v2998_v19  ;;  %v1290_v26 = vpop.f32.mrb[55].mxu0  ;;  %2093 = vmatprep.mubr.bf16.mxu1 %v1372_v23 }
 0x383   : > { %2413 = vtanh.f32 %v1288_v38  ;;  %v1291_v27 = vadd.f32 %v2998_v19, %v1290_v26  ;;  %2094 = vmatmul.mubr.bf16.gmra.mrb[44].mxu1 %v1373_v20 }
 0x384   : > { %v2404_v28 = vpop.eup %2403  ;;  %2415 = vtanh.f32 %v1299_v25 }
 0x385   : > { %v2406_v29 = vpop.eup %2405  ;;  %2417 = vtanh.f32 %v1291_v27 }
 0x386   : > { %v2408_v30 = vpop.eup %2407 }
 0x387   : > { %v2410_v32 = vpop.eup %2409  ;;  %v2059_v33 = vpop.f32.mrb[56].mxu0  ;;  %v1375_v34 = vpack.c.bf16 %v2408_v30, %v2404_v28 }
 0x388   : > { %v1312_v35 = vadd.f32 %v2059_v33, %v2998_v19  ;;  %v1303_v36 = vpop.f32.mrb[57].mxu0  ;;  %v1374_v37 = vpack.c.bf16 %v2410_v32, %v2406_v29 }
 0x389   : > { %v1304_v39 = vadd.f32 %v2998_v19, %v1303_v36  ;;  %v2060_v40 = vpop.f32.mrb[58].mxu0 }
 0x38a   : > { %2419 = vtanh.f32 %v1312_v35  ;;  %v1315_v41 = vadd.f32 %v2060_v40, %v2998_v19  ;;  %v1306_v42 = vpop.f32.mrb[59].mxu0  ;;  %2097 = vmatprep.mubr.bf16.mxu1 %v1374_v37 }
 0x38b   : > { %2421 = vtanh.f32 %v1304_v39  ;;  %v1307_v43 = vadd.f32 %v2998_v19, %v1306_v42  ;;  %2098 = vmatmul.mubr.bf16.gmra.mrb[48].mxu1 %v1375_v34 }
 0x38c   : > { %v2412_v44 = vpop.eup %2411  ;;  %2423 = vtanh.f32 %v1315_v41 }
 0x38d   : > { %v2414_v45 = vpop.eup %2413  ;;  %2425 = vtanh.f32 %v1307_v43 }
 0x38e   : > { %v2416_v46 = vpop.eup %2415 }
 0x38f   : > { %v2418_v47 = vpop.eup %2417  ;;  %v2063_v48 = vpop.f32.mrb[60].mxu0  ;;  %v1377_v49 = vpack.c.bf16 %v2416_v46, %v2412_v44 }
 0x390   : > { %v1328_v50 = vadd.f32 %v2063_v48, %v2998_v19  ;;  %v1319_v51 = vpop.f32.mrb[61].mxu0  ;;  %v1376_v52 = vpack.c.bf16 %v2418_v47, %v2414_v45 }
 0x391   : > { %v1320_v53 = vadd.f32 %v2998_v19, %v1319_v51  ;;  %v2064_v54 = vpop.f32.mrb[62].mxu0 }
 0x392   : > { %2427 = vtanh.f32 %v1328_v50  ;;  %v1331_v55 = vadd.f32 %v2064_v54, %v2998_v19  ;;  %v1322_v56 = vpop.f32.mrb[63].mxu0  ;;  %2101 = vmatprep.mubr.bf16.mxu1 %v1376_v52 }
 0x393   : > { %2429 = vtanh.f32 %v1320_v53  ;;  %v1323_v57 = vadd.f32 %v2998_v19, %v1322_v56  ;;  %2102 = vmatmul.mubr.bf16.gmra.mrb[52].mxu1 %v1377_v49  ;;  %v3037_v19 = vld [vmem:[%s3129_s8] ss:$0 sm:$0xff] }
 0x394   : > { %v2420_v58 = vpop.eup %2419  ;;  %2431 = vtanh.f32 %v1331_v55 }
 0x395   : > { %v2422_v59 = vpop.eup %2421  ;;  %2433 = vtanh.f32 %v1323_v57 }
 0x396   : > { %v2424_v60 = vpop.eup %2423 }
 0x397   : > { %v2426_v61 = vpop.eup %2425  ;;  %v1379_v62 = vpack.c.bf16 %v2424_v60, %v2420_v58 }
 0x398   : > { %v1378_v63 = vpack.c.bf16 %v2426_v61, %v2422_v59 }
 0x39a   : > { %2105 = vmatprep.mubr.bf16.mxu1 %v1378_v63 }
 0x39b   : > { %2106 = vmatmul.mubr.bf16.gmra.mrb[56].mxu1 %v1379_v62 }
 0x39c   : > { %v2428_v0 = vpop.eup %2427 }
 0x39d   : > { %v2430_v1 = vpop.eup %2429 }
 0x39e   : > { %v2432_v2 = vpop.eup %2431 }
 0x39f   : > { %v2434_v3 = vpop.eup %2433  ;;  %v1381_v4 = vpack.c.bf16 %v2432_v2, %v2428_v0 }
 0x3a0   : > { %v1380_v5 = vpack.c.bf16 %v2434_v3, %v2430_v1 }
 0x3a2   : > { %2109 = vmatprep.mubr.bf16.mxu1 %v1380_v5 }
 0x3a3   : > { %2110 = vmatmul.mubr.bf16.gmra.mrb[60].mxu1 %v1381_v4 }
 0x43e   : > { %v2083_v6 = vpop.f32.mrb[32].mxu1 }
 0x43f   : > { %v1496_v7 = vadd.f32 %v2083_v6, %v3037_v19  ;;  %v1487_v8 = vpop.f32.mrb[33].mxu1 }
 0x440   : > { %v1488_v9 = vadd.f32 %v3037_v19, %v1487_v8  ;;  %v2084_v10 = vpop.f32.mrb[34].mxu1 }
 0x441   : > { %1616 = vst [vmem:[%s3042_s30 + $0x10] sm:$0xff] %v1496_v7  ;;  %v1499_v11 = vadd.f32 %v2084_v10, %v3037_v19  ;;  %v1490_v12 = vpop.f32.mrb[35].mxu1 }
 0x442   : > { %1614 = vst [vmem:[%s3042_s30] sm:$0xff] %v1488_v9  ;;  %v1491_v13 = vadd.f32 %v3037_v19, %v1490_v12 }
 0x443   : > { %1617 = vst [vmem:[%s3042_s30 + $0x18] sm:$0xff] %v1499_v11 }
 0x444   : > { %1615 = vst [vmem:[%s3042_s30 + $0x8] sm:$0xff] %v1491_v13 }
 0x446   : > { %v2087_v14 = vpop.f32.mrb[36].mxu1 }
 0x447   : > { %v1512_v15 = vadd.f32 %v2087_v14, %v3037_v19  ;;  %v1503_v16 = vpop.f32.mrb[37].mxu1 }
 0x448   : > { %v1504_v17 = vadd.f32 %v3037_v19, %v1503_v16  ;;  %v2088_v31 = vpop.f32.mrb[38].mxu1 }
 0x449   : > { %1620 = vst [vmem:[%s3042_s30 + $0x30] sm:$0xff] %v1512_v15  ;;  %v1515_v18 = vadd.f32 %v2088_v31, %v3037_v19  ;;  %v1506_v20 = vpop.f32.mrb[39].mxu1 }
 0x44a   : > { %1618 = vst [vmem:[%s3042_s30 + $0x20] sm:$0xff] %v1504_v17  ;;  %v1507_v21 = vadd.f32 %v3037_v19, %v1506_v20 }
 0x44b   : > { %1621 = vst [vmem:[%s3042_s30 + $0x38] sm:$0xff] %v1515_v18 }
 0x44c   : > { %1619 = vst [vmem:[%s3042_s30 + $0x28] sm:$0xff] %v1507_v21 }
 0x44e   : > { %v2091_v22 = vpop.f32.mrb[40].mxu1 }
 0x44f   : > { %v1528_v23 = vadd.f32 %v2091_v22, %v3037_v19  ;;  %v1519_v38 = vpop.f32.mrb[41].mxu1 }
 0x450   : > { %v1520_v24 = vadd.f32 %v3037_v19, %v1519_v38  ;;  %v2092_v25 = vpop.f32.mrb[42].mxu1 }
 0x451   : > { %1624 = vst [vmem:[%s3042_s30 + $0x50] sm:$0xff] %v1528_v23  ;;  %v1531_v26 = vadd.f32 %v2092_v25, %v3037_v19  ;;  %v1522_v27 = vpop.f32.mrb[43].mxu1 }
 0x452   : > { %1622 = vst [vmem:[%s3042_s30 + $0x40] sm:$0xff] %v1520_v24  ;;  %v1523_v28 = vadd.f32 %v3037_v19, %v1522_v27 }
 0x453   : > { %1625 = vst [vmem:[%s3042_s30 + $0x58] sm:$0xff] %v1531_v26 }
 0x454   : > { %1623 = vst [vmem:[%s3042_s30 + $0x48] sm:$0xff] %v1523_v28 }
 0x456   : > { %v2095_v29 = vpop.f32.mrb[44].mxu1 }
 0x457   : > { %v1544_v30 = vadd.f32 %v2095_v29, %v3037_v19  ;;  %v1535_v32 = vpop.f32.mrb[45].mxu1 }
 0x458   : > { %v1536_v33 = vadd.f32 %v3037_v19, %v1535_v32  ;;  %v2096_v34 = vpop.f32.mrb[46].mxu1 }
 0x459   : > { %1628 = vst [vmem:[%s3042_s30 + $0x70] sm:$0xff] %v1544_v30  ;;  %v1547_v35 = vadd.f32 %v2096_v34, %v3037_v19  ;;  %v1538_v36 = vpop.f32.mrb[47].mxu1 }
 0x45a   : > { %1626 = vst [vmem:[%s3042_s30 + $0x60] sm:$0xff] %v1536_v33  ;;  %v1539_v37 = vadd.f32 %v3037_v19, %v1538_v36 }
 0x45b   : > { %1629 = vst [vmem:[%s3042_s30 + $0x78] sm:$0xff] %v1547_v35 }
 0x45c   : > { %1627 = vst [vmem:[%s3042_s30 + $0x68] sm:$0xff] %v1539_v37 }
 0x45e   : > { %v2099_v39 = vpop.f32.mrb[48].mxu1 }
 0x45f   : > { %v1560_v40 = vadd.f32 %v2099_v39, %v3037_v19  ;;  %v1551_v41 = vpop.f32.mrb[49].mxu1 }
 0x460   : > { %v1552_v42 = vadd.f32 %v3037_v19, %v1551_v41  ;;  %v2100_v43 = vpop.f32.mrb[50].mxu1 }
 0x461   : > { %1632 = vst [vmem:[%s3042_s30 + $0x90] sm:$0xff] %v1560_v40  ;;  %v1563_v44 = vadd.f32 %v2100_v43, %v3037_v19  ;;  %v1554_v45 = vpop.f32.mrb[51].mxu1 }
 0x462   : > { %1630 = vst [vmem:[%s3042_s30 + $0x80] sm:$0xff] %v1552_v42  ;;  %v1555_v46 = vadd.f32 %v3037_v19, %v1554_v45 }
 0x463   : > { %1633 = vst [vmem:[%s3042_s30 + $0x98] sm:$0xff] %v1563_v44 }
 0x464   : > { %1631 = vst [vmem:[%s3042_s30 + $0x88] sm:$0xff] %v1555_v46 }
 0x466   : > { %v2103_v47 = vpop.f32.mrb[52].mxu1 }
 0x467   : > { %v1576_v48 = vadd.f32 %v2103_v47, %v3037_v19  ;;  %v1567_v49 = vpop.f32.mrb[53].mxu1 }
 0x468   : > { %v1568_v50 = vadd.f32 %v3037_v19, %v1567_v49  ;;  %v2104_v51 = vpop.f32.mrb[54].mxu1 }
 0x469   : > { %1636 = vst [vmem:[%s3042_s30 + $0xb0] sm:$0xff] %v1576_v48  ;;  %v1579_v52 = vadd.f32 %v2104_v51, %v3037_v19  ;;  %v1570_v53 = vpop.f32.mrb[55].mxu1 }
 0x46a   : > { %1634 = vst [vmem:[%s3042_s30 + $0xa0] sm:$0xff] %v1568_v50  ;;  %v1571_v54 = vadd.f32 %v3037_v19, %v1570_v53 }
 0x46b   : > { %1637 = vst [vmem:[%s3042_s30 + $0xb8] sm:$0xff] %v1579_v52 }
 0x46c   : > { %1635 = vst [vmem:[%s3042_s30 + $0xa8] sm:$0xff] %v1571_v54 }
 0x46e   : > { %v2107_v55 = vpop.f32.mrb[56].mxu1 }
 0x46f   : > { %v1592_v56 = vadd.f32 %v2107_v55, %v3037_v19  ;;  %v1583_v57 = vpop.f32.mrb[57].mxu1 }
 0x470   : > { %v1584_v58 = vadd.f32 %v3037_v19, %v1583_v57  ;;  %v2108_v59 = vpop.f32.mrb[58].mxu1 }
 0x471   : > { %1640 = vst [vmem:[%s3042_s30 + $0xd0] sm:$0xff] %v1592_v56  ;;  %v1595_v60 = vadd.f32 %v2108_v59, %v3037_v19  ;;  %v1586_v61 = vpop.f32.mrb[59].mxu1 }
 0x472   : > { %1638 = vst [vmem:[%s3042_s30 + $0xc0] sm:$0xff] %v1584_v58  ;;  %v1587_v62 = vadd.f32 %v3037_v19, %v1586_v61 }
 0x473   : > { %1641 = vst [vmem:[%s3042_s30 + $0xd8] sm:$0xff] %v1595_v60 }
 0x474   : > { %1639 = vst [vmem:[%s3042_s30 + $0xc8] sm:$0xff] %v1587_v62 }
 0x476   : > { %v2111_v63 = vpop.f32.mrb[60].mxu1 }
 0x477   : > { %v1608_v0 = vadd.f32 %v2111_v63, %v3037_v19  ;;  %v1599_v1 = vpop.f32.mrb[61].mxu1 }
 0x478   : > { %v1600_v2 = vadd.f32 %v3037_v19, %v1599_v1  ;;  %v2112_v3 = vpop.f32.mrb[62].mxu1 }
 0x479   : > { %1644 = vst [vmem:[%s3042_s30 + $0xf0] sm:$0xff] %v1608_v0  ;;  %v1611_v4 = vadd.f32 %v2112_v3, %v3037_v19  ;;  %v1602_v5 = vpop.f32.mrb[63].mxu1 }
 0x47a   : > { %1642 = vst [vmem:[%s3042_s30 + $0xe0] sm:$0xff] %v1600_v2  ;;  %v1603_v6 = vadd.f32 %v3037_v19, %v1602_v5 }
 0x47b   : > { %1645 = vst [vmem:[%s3042_s30 + $0xf8] sm:$0xff] %v1611_v4 }
 0x47c   : > { %1643 = vst [vmem:[%s3042_s30 + $0xe8] sm:$0xff] %v1603_v6 }
 0x47d PF: > { %p21_p11 = scmp.ge.s32.totalorder %s2832_s29, 10   ;;  %s3148_s30 = smov %s2611_s10 }
 0x47e   : > { %s3149_s10 = smov %s2615_s11  ;;  %s3150_s11 = smov %s2843_s27 }
 0x47f   : > { %s3151_s12 = smov %s2832_s29  ;;  %23 = sbr.rel (!%p21_p11) target bundleno = 7 (0x7), region = 112 }
 0x486   :  { %1668 = vsyncpa [#allocation3], 1 }
 0x487   :  { %1670 = vsyncpa [#allocation3 + $0x1], 1 }
 0x488   :  { %1671 = vsyncpa [#allocation5], 1 }
 0x489   :  { %1672 = vsyncpa [#allocation8], 1 }

</bundles_post_ra>
